<compile_context>
chip_gen: v6e
topology: v6e:2x2x1
jax: 0.10.0
libtpu: 0.0.40
codegen_flags: <defaults>
</compile_context>

<pallas_src>
import functools

import jax
import jax.numpy as jnp
from jax import lax
from jax.experimental import pallas as pl
from jax.experimental.pallas import tpu as pltpu


def _pick_batch_tile(B, T, c_word, itemsize):
    """Batch tile: Bt == B or Bt % 8 == 0 (BlockSpec rule); ~4 MB word tiles."""
    if B % 8 != 0:
        return B
    target_bytes = 4 << 20  # ~4 MB word tile per grid step
    min_steps = 2           # keep >= 2 grid steps when possible (v7x megacore)
    bt = 8
    while (B % (bt * 2) == 0
           and (bt * 2) * T * c_word * itemsize <= target_bytes
           and B // (bt * 2) >= min_steps):
        bt *= 2
    return bt


def _kernel(idx_ref, sl_ref, d_ref, w_ref, doc_ref, word_ref, lp_ref,
            *, bt, seq, c_word):
    # ---------------- doc scores: log_softmax over class dim -----------------
    d = d_ref[...].astype(jnp.float32)
    dm = jnp.max(d, axis=-1, keepdims=True)
    dlse = jnp.log(jnp.sum(jnp.exp(d - dm), axis=-1, keepdims=True)) + dm
    doc_ref[...] = (d - dlse).astype(doc_ref.dtype)

    # ---------------- word scores: log_softmax FIRST (vectorized), ----------
    # then per-row gather (softmax over classes commutes with the seq gather).
    w = w_ref[...].astype(jnp.float32)
    wm = jnp.max(w, axis=-1, keepdims=True)
    wlse = jnp.log(jnp.sum(jnp.exp(w - wm), axis=-1, keepdims=True)) + wm
    lp_ref[...] = w - wlse

    b0 = pl.program_id(0) * bt

    def per_batch(b, carry):
        base = (b0 + b) * seq          # hoisted: no div/mod per row
        sl = sl_ref[b0 + b]            # scalar read from SMEM
        for t in range(seq):           # static T -> fully unrolled inner loop
            src = idx_ref[base + t]    # scalar read from SMEM
            src = jnp.clip(src, 0, seq - 1)
            row = lp_ref[b, pl.ds(src, 1), :]
            # zero tokens past the sequence length (reference drops them)
            row = jnp.where(t < sl, row, 0.0)
            word_ref[b, pl.ds(t, 1), :] = row.astype(word_ref.dtype)
        return carry

    lax.fori_loop(0, bt, per_batch, 0, unroll=bt * seq <= 64)


def intent_slot_scores(logits, seq_lengths, token_indices=None):
    d_logits, w_logits = logits
    B, c_doc = d_logits.shape
    _, T, c_word = w_logits.shape

    if token_indices is None:
        token_indices = jnp.broadcast_to(
            jnp.arange(T, dtype=jnp.int32)[None, :], (B, T)
        )
    idx_flat = token_indices.astype(jnp.int32).reshape(B * T)   # 1-D SMEM
    seq_lengths_1d = seq_lengths.astype(jnp.int32).reshape(B)   # 1-D SMEM

    w_itemsize = jnp.dtype(w_logits.dtype).itemsize
    d_itemsize = jnp.dtype(d_logits.dtype).itemsize
    bt = _pick_batch_tile(B, T, c_word, w_itemsize)
    grid = (B // bt,)

    # VMEM budget: 2x double-buffered in + 2x out word/doc tiles + f32 scratch.
    word_tile = bt * T * c_word * w_itemsize
    doc_tile = bt * c_doc * d_itemsize
    est = 4 * (word_tile + doc_tile) + bt * T * c_word * 4 + (1 << 20)
    vmem_limit = int(min(max(2 * est, 32 << 20), 48 << 20))

    kernel = functools.partial(_kernel, bt=bt, seq=T, c_word=c_word)

    grid_spec = pltpu.PrefetchScalarGridSpec(
        num_scalar_prefetch=2,  # token_indices (flat) + seq_lengths -> SMEM
        grid=grid,
        in_specs=[
            pl.BlockSpec((bt, c_doc), lambda i, idx, sl: (i, 0)),        # doc
            pl.BlockSpec((bt, T, c_word), lambda i, idx, sl: (i, 0, 0)),  # word
        ],
        out_specs=[
            pl.BlockSpec((bt, c_doc), lambda i, idx, sl: (i, 0)),
            pl.BlockSpec((bt, T, c_word), lambda i, idx, sl: (i, 0, 0)),
        ],
        scratch_shapes=[pltpu.VMEM((bt, T, c_word), jnp.float32)],
    )

    doc_out, word_out = pl.pallas_call(
        kernel,
        out_shape=(
            jax.ShapeDtypeStruct((B, c_doc), d_logits.dtype),
            jax.ShapeDtypeStruct((B, T, c_word), w_logits.dtype),
        ),
        grid_spec=grid_spec,
        compiler_params=pltpu.CompilerParams(
            dimension_semantics=("parallel",),
            vmem_limit_bytes=vmem_limit,
        ),
    )(idx_flat, seq_lengths_1d, d_logits, w_logits)

    return doc_out, word_out


if __name__ == "__main__":
    key = jax.random.PRNGKey(0)
    k1, k2, k3 = jax.random.split(key, 3)

    B, T, C_DOC, C_WORD = 2, 8, 16, 16
    d_logits = jax.random.normal(k1, (B, C_DOC), dtype=jnp.float32)
    w_logits = jax.random.normal(k2, (B, T, C_WORD), dtype=jnp.float32)
    token_indices = jax.random.randint(k3, (B, T), 0, T, dtype=jnp.int32)
    seq_lengths = jnp.array([8, 5], dtype=jnp.int32)

    d_out, w_out = intent_slot_scores(
        (d_logits, w_logits), seq_lengths, token_indices
    )
    jax.block_until_ready((d_out, w_out))

    # reference (plain JAX) check
    d_ref = jax.nn.log_softmax(d_logits, axis=-1)
    gathered = jnp.take_along_axis(w_logits, token_indices[:, :, None], axis=1)
    w_ref = jax.nn.log_softmax(gathered, axis=-1)
    mask = jnp.arange(T)[None, :, None] < seq_lengths[:, None, None]
    w_ref = jnp.where(mask, w_ref, 0.0)

    assert d_out.shape == (B, C_DOC) and w_out.shape == (B, T, C_WORD)
    assert jnp.allclose(d_out, d_ref, atol=1e-5), "doc scores mismatch"
    assert jnp.allclose(w_out, w_ref, atol=1e-5), "word scores mismatch"
    print("KERNEL_OK")
</pallas_src>

<mosaic_0001>
module attributes {stable_mosaic.version = 11 : i64} {
  func.func @_kernel(%arg0: i32, %arg1: memref<16xi32, #tpu.memory_space<smem>>, %arg2: memref<2xi32, #tpu.memory_space<smem>>, %arg3: memref<2x16xf32, #tpu.memory_space<vmem>>, %arg4: memref<2x8x16xf32, #tpu.memory_space<vmem>>, %arg5: memref<2x16xf32, #tpu.memory_space<vmem>>, %arg6: memref<2x8x16xf32, #tpu.memory_space<vmem>>, %arg7: memref<2x8x16xf32, #tpu.memory_space<vmem>>) attributes {dimension_semantics = [#tpu.dimension_semantics<parallel>], iteration_bounds = array<i64: 1>, scalar_prefetch = 2 : i64, scratch_operands = 1 : i64, tpu.core_type = #tpu.core_type<tc>, window_params = [{transform_indices = @transform_0, window_bounds = array<i64: 2, 16>}, {transform_indices = @transform_1, window_bounds = array<i64: 2, 8, 16>}, {transform_indices = @transform_2, window_bounds = array<i64: 2, 16>}, {transform_indices = @transform_3, window_bounds = array<i64: 2, 8, 16>}]} {
    %c0 = arith.constant 0 : index
    %c0_0 = arith.constant 0 : index
    %0 = vector.load %arg3[%c0, %c0_0] : memref<2x16xf32, #tpu.memory_space<vmem>>, vector<2x16xf32>
    %cst = arith.constant dense<0xFF800000> : vector<2xf32>
    %1 = vector.multi_reduction <maximumf>, %0, %cst [1] : vector<2x16xf32> to vector<2xf32>
    %2 = vector.shape_cast %1 : vector<2xf32> to vector<2x1xf32>
    %3 = vector.broadcast %2 : vector<2x1xf32> to vector<2x16xf32>
    %4 = arith.subf %0, %3 : vector<2x16xf32>
    %5 = math.exp %4 : vector<2x16xf32>
    %cst_1 = arith.constant dense<0.000000e+00> : vector<2xf32>
    %6 = vector.multi_reduction <add>, %5, %cst_1 [1] : vector<2x16xf32> to vector<2xf32>
    %7 = vector.shape_cast %6 : vector<2xf32> to vector<2x1xf32>
    %8 = math.log %7 : vector<2x1xf32>
    %9 = arith.addf %8, %2 : vector<2x1xf32>
    %10 = vector.broadcast %9 : vector<2x1xf32> to vector<2x16xf32>
    %11 = arith.subf %0, %10 : vector<2x16xf32>
    %c0_2 = arith.constant 0 : index
    %c0_3 = arith.constant 0 : index
    %12 = vector.load %arg5[%c0_2, %c0_3] : memref<2x16xf32, #tpu.memory_space<vmem>>, vector<2x16xf32>
    tpu.vector_store %arg5[%c0_2, %c0_3], %11 {strides = array<i32>} : memref<2x16xf32, #tpu.memory_space<vmem>>, vector<2x16xf32>,
    %c0_4 = arith.constant 0 : index
    %c0_5 = arith.constant 0 : index
    %c0_6 = arith.constant 0 : index
    %13 = vector.load %arg4[%c0_4, %c0_5, %c0_6] : memref<2x8x16xf32, #tpu.memory_space<vmem>>, vector<2x8x16xf32>
    %cst_7 = arith.constant dense<0xFF800000> : vector<2x8xf32>
    %14 = vector.multi_reduction <maximumf>, %13, %cst_7 [2] : vector<2x8x16xf32> to vector<2x8xf32>
    %15 = vector.shape_cast %14 : vector<2x8xf32> to vector<2x8x1xf32>
    %16 = vector.broadcast %15 : vector<2x8x1xf32> to vector<2x8x16xf32>
    %17 = arith.subf %13, %16 : vector<2x8x16xf32>
    %18 = math.exp %17 : vector<2x8x16xf32>
    %cst_8 = arith.constant dense<0.000000e+00> : vector<2x8xf32>
    %19 = vector.multi_reduction <add>, %18, %cst_8 [2] : vector<2x8x16xf32> to vector<2x8xf32>
    %20 = vector.shape_cast %19 : vector<2x8xf32> to vector<2x8x1xf32>
    %21 = math.log %20 : vector<2x8x1xf32>
    %22 = arith.addf %21, %15 : vector<2x8x1xf32>
    %23 = vector.broadcast %22 : vector<2x8x1xf32> to vector<2x8x16xf32>
    %24 = arith.subf %13, %23 : vector<2x8x16xf32>
    %c0_9 = arith.constant 0 : index
    %c0_10 = arith.constant 0 : index
    %c0_11 = arith.constant 0 : index
    %25 = vector.load %arg7[%c0_9, %c0_10, %c0_11] : memref<2x8x16xf32, #tpu.memory_space<vmem>>, vector<2x8x16xf32>
    tpu.vector_store %arg7[%c0_9, %c0_10, %c0_11], %24 {strides = array<i32>} : memref<2x8x16xf32, #tpu.memory_space<vmem>>, vector<2x8x16xf32>,
    %c2_i32 = arith.constant 2 : i32
    %26 = arith.muli %arg0, %c2_i32 : i32
    %c0_i32 = arith.constant 0 : i32
    %27 = arith.addi %26, %c0_i32 : i32
    %c8_i32 = arith.constant 8 : i32
    %28 = arith.muli %27, %c8_i32 : i32
    %29 = arith.addi %26, %c0_i32 : i32
    %30 = arith.index_cast %29 : i32 to index
    %31 = memref.load %arg2[%30] : memref<2xi32, #tpu.memory_space<smem>>
    %c0_i32_12 = arith.constant 0 : i32
    %32 = arith.addi %28, %c0_i32_12 : i32
    %33 = arith.index_cast %32 : i32 to index
    %34 = memref.load %arg1[%33] : memref<16xi32, #tpu.memory_space<smem>>
    %c0_i32_13 = arith.constant 0 : i32
    %c7_i32 = arith.constant 7 : i32
    %35 = arith.maxsi %c0_i32_13, %34 : i32
    %36 = arith.minsi %c7_i32, %35 : i32
    %37 = arith.index_cast %c0_i32 : i32 to index
    %38 = arith.index_cast %36 : i32 to index
    %c0_14 = arith.constant 0 : index
    %39 = vector.load %arg7[%37, %38, %c0_14] : memref<2x8x16xf32, #tpu.memory_space<vmem>>, vector<1x1x16xf32>
    %40 = vector.shape_cast %39 : vector<1x1x16xf32> to vector<1x16xf32>
    %c0_i32_15 = arith.constant 0 : i32
    %41 = arith.cmpi sgt, %31, %c0_i32_15 : i32
    %cst_16 = arith.constant 0.000000e+00 : f32
    %42 = vector.broadcast %cst_16 : f32 to vector<1x16xf32>
    %43 = arith.select %41, %40, %42 : vector<1x16xf32>
    %44 = arith.index_cast %c0_i32 : i32 to index
    %c0_17 = arith.constant 0 : index
    %c0_18 = arith.constant 0 : index
    %45 = vector.load %arg6[%44, %c0_17, %c0_18] : memref<2x8x16xf32, #tpu.memory_space<vmem>>, vector<1x1x16xf32>
    %46 = vector.shape_cast %45 : vector<1x1x16xf32> to vector<1x16xf32>
    %47 = vector.shape_cast %43 : vector<1x16xf32> to vector<1x1x16xf32>
    tpu.vector_store %arg6[%44, %c0_17, %c0_18], %47 {strides = array<i32>} : memref<2x8x16xf32, #tpu.memory_space<vmem>>, vector<1x1x16xf32>,
    %c1_i32 = arith.constant 1 : i32
    %48 = arith.addi %28, %c1_i32 : i32
    %49 = arith.index_cast %48 : i32 to index
    %50 = memref.load %arg1[%49] : memref<16xi32, #tpu.memory_space<smem>>
    %c0_i32_19 = arith.constant 0 : i32
    %c7_i32_20 = arith.constant 7 : i32
    %51 = arith.maxsi %c0_i32_19, %50 : i32
    %52 = arith.minsi %c7_i32_20, %51 : i32
    %53 = arith.index_cast %c0_i32 : i32 to index
    %54 = arith.index_cast %52 : i32 to index
    %c0_21 = arith.constant 0 : index
    %55 = vector.load %arg7[%53, %54, %c0_21] : memref<2x8x16xf32, #tpu.memory_space<vmem>>, vector<1x1x16xf32>
    %56 = vector.shape_cast %55 : vector<1x1x16xf32> to vector<1x16xf32>
    %c1_i32_22 = arith.constant 1 : i32
    %57 = arith.cmpi sgt, %31, %c1_i32_22 : i32
    %cst_23 = arith.constant 0.000000e+00 : f32
    %58 = vector.broadcast %cst_23 : f32 to vector<1x16xf32>
    %59 = arith.select %57, %56, %58 : vector<1x16xf32>
    %60 = arith.index_cast %c0_i32 : i32 to index
    %c1 = arith.constant 1 : index
    %c0_24 = arith.constant 0 : index
    %61 = vector.load %arg6[%60, %c1, %c0_24] : memref<2x8x16xf32, #tpu.memory_space<vmem>>, vector<1x1x16xf32>
    %62 = vector.shape_cast %61 : vector<1x1x16xf32> to vector<1x16xf32>
    %63 = vector.shape_cast %59 : vector<1x16xf32> to vector<1x1x16xf32>
    tpu.vector_store %arg6[%60, %c1, %c0_24], %63 {strides = array<i32>} : memref<2x8x16xf32, #tpu.memory_space<vmem>>, vector<1x1x16xf32>,
    %c2_i32_25 = arith.constant 2 : i32
    %64 = arith.addi %28, %c2_i32_25 : i32
    %65 = arith.index_cast %64 : i32 to index
    %66 = memref.load %arg1[%65] : memref<16xi32, #tpu.memory_space<smem>>
    %c0_i32_26 = arith.constant 0 : i32
    %c7_i32_27 = arith.constant 7 : i32
    %67 = arith.maxsi %c0_i32_26, %66 : i32
    %68 = arith.minsi %c7_i32_27, %67 : i32
    %69 = arith.index_cast %c0_i32 : i32 to index
    %70 = arith.index_cast %68 : i32 to index
    %c0_28 = arith.constant 0 : index
    %71 = vector.load %arg7[%69, %70, %c0_28] : memref<2x8x16xf32, #tpu.memory_space<vmem>>, vector<1x1x16xf32>
    %72 = vector.shape_cast %71 : vector<1x1x16xf32> to vector<1x16xf32>
    %c2_i32_29 = arith.constant 2 : i32
    %73 = arith.cmpi sgt, %31, %c2_i32_29 : i32
    %cst_30 = arith.constant 0.000000e+00 : f32
    %74 = vector.broadcast %cst_30 : f32 to vector<1x16xf32>
    %75 = arith.select %73, %72, %74 : vector<1x16xf32>
    %76 = arith.index_cast %c0_i32 : i32 to index
    %c2 = arith.constant 2 : index
    %c0_31 = arith.constant 0 : index
    %77 = vector.load %arg6[%76, %c2, %c0_31] : memref<2x8x16xf32, #tpu.memory_space<vmem>>, vector<1x1x16xf32>
    %78 = vector.shape_cast %77 : vector<1x1x16xf32> to vector<1x16xf32>
    %79 = vector.shape_cast %75 : vector<1x16xf32> to vector<1x1x16xf32>
    tpu.vector_store %arg6[%76, %c2, %c0_31], %79 {strides = array<i32>} : memref<2x8x16xf32, #tpu.memory_space<vmem>>, vector<1x1x16xf32>,
    %c3_i32 = arith.constant 3 : i32
    %80 = arith.addi %28, %c3_i32 : i32
    %81 = arith.index_cast %80 : i32 to index
    %82 = memref.load %arg1[%81] : memref<16xi32, #tpu.memory_space<smem>>
    %c0_i32_32 = arith.constant 0 : i32
    %c7_i32_33 = arith.constant 7 : i32
    %83 = arith.maxsi %c0_i32_32, %82 : i32
    %84 = arith.minsi %c7_i32_33, %83 : i32
    %85 = arith.index_cast %c0_i32 : i32 to index
    %86 = arith.index_cast %84 : i32 to index
    %c0_34 = arith.constant 0 : index
    %87 = vector.load %arg7[%85, %86, %c0_34] : memref<2x8x16xf32, #tpu.memory_space<vmem>>, vector<1x1x16xf32>
    %88 = vector.shape_cast %87 : vector<1x1x16xf32> to vector<1x16xf32>
    %c3_i32_35 = arith.constant 3 : i32
    %89 = arith.cmpi sgt, %31, %c3_i32_35 : i32
    %cst_36 = arith.constant 0.000000e+00 : f32
    %90 = vector.broadcast %cst_36 : f32 to vector<1x16xf32>
    %91 = arith.select %89, %88, %90 : vector<1x16xf32>
    %92 = arith.index_cast %c0_i32 : i32 to index
    %c3 = arith.constant 3 : index
    %c0_37 = arith.constant 0 : index
    %93 = vector.load %arg6[%92, %c3, %c0_37] : memref<2x8x16xf32, #tpu.memory_space<vmem>>, vector<1x1x16xf32>
    %94 = vector.shape_cast %93 : vector<1x1x16xf32> to vector<1x16xf32>
    %95 = vector.shape_cast %91 : vector<1x16xf32> to vector<1x1x16xf32>
    tpu.vector_store %arg6[%92, %c3, %c0_37], %95 {strides = array<i32>} : memref<2x8x16xf32, #tpu.memory_space<vmem>>, vector<1x1x16xf32>,
    %c4_i32 = arith.constant 4 : i32
    %96 = arith.addi %28, %c4_i32 : i32
    %97 = arith.index_cast %96 : i32 to index
    %98 = memref.load %arg1[%97] : memref<16xi32, #tpu.memory_space<smem>>
    %c0_i32_38 = arith.constant 0 : i32
    %c7_i32_39 = arith.constant 7 : i32
    %99 = arith.maxsi %c0_i32_38, %98 : i32
    %100 = arith.minsi %c7_i32_39, %99 : i32
    %101 = arith.index_cast %c0_i32 : i32 to index
    %102 = arith.index_cast %100 : i32 to index
    %c0_40 = arith.constant 0 : index
    %103 = vector.load %arg7[%101, %102, %c0_40] : memref<2x8x16xf32, #tpu.memory_space<vmem>>, vector<1x1x16xf32>
    %104 = vector.shape_cast %103 : vector<1x1x16xf32> to vector<1x16xf32>
    %c4_i32_41 = arith.constant 4 : i32
    %105 = arith.cmpi sgt, %31, %c4_i32_41 : i32
    %cst_42 = arith.constant 0.000000e+00 : f32
    %106 = vector.broadcast %cst_42 : f32 to vector<1x16xf32>
    %107 = arith.select %105, %104, %106 : vector<1x16xf32>
    %108 = arith.index_cast %c0_i32 : i32 to index
    %c4 = arith.constant 4 : index
    %c0_43 = arith.constant 0 : index
    %109 = vector.load %arg6[%108, %c4, %c0_43] : memref<2x8x16xf32, #tpu.memory_space<vmem>>, vector<1x1x16xf32>
    %110 = vector.shape_cast %109 : vector<1x1x16xf32> to vector<1x16xf32>
    %111 = vector.shape_cast %107 : vector<1x16xf32> to vector<1x1x16xf32>
    tpu.vector_store %arg6[%108, %c4, %c0_43], %111 {strides = array<i32>} : memref<2x8x16xf32, #tpu.memory_space<vmem>>, vector<1x1x16xf32>,
    %c5_i32 = arith.constant 5 : i32
    %112 = arith.addi %28, %c5_i32 : i32
    %113 = arith.index_cast %112 : i32 to index
    %114 = memref.load %arg1[%113] : memref<16xi32, #tpu.memory_space<smem>>
    %c0_i32_44 = arith.constant 0 : i32
    %c7_i32_45 = arith.constant 7 : i32
    %115 = arith.maxsi %c0_i32_44, %114 : i32
    %116 = arith.minsi %c7_i32_45, %115 : i32
    %117 = arith.index_cast %c0_i32 : i32 to index
    %118 = arith.index_cast %116 : i32 to index
    %c0_46 = arith.constant 0 : index
    %119 = vector.load %arg7[%117, %118, %c0_46] : memref<2x8x16xf32, #tpu.memory_space<vmem>>, vector<1x1x16xf32>
    %120 = vector.shape_cast %119 : vector<1x1x16xf32> to vector<1x16xf32>
    %c5_i32_47 = arith.constant 5 : i32
    %121 = arith.cmpi sgt, %31, %c5_i32_47 : i32
    %cst_48 = arith.constant 0.000000e+00 : f32
    %122 = vector.broadcast %cst_48 : f32 to vector<1x16xf32>
    %123 = arith.select %121, %120, %122 : vector<1x16xf32>
    %124 = arith.index_cast %c0_i32 : i32 to index
    %c5 = arith.constant 5 : index
    %c0_49 = arith.constant 0 : index
    %125 = vector.load %arg6[%124, %c5, %c0_49] : memref<2x8x16xf32, #tpu.memory_space<vmem>>, vector<1x1x16xf32>
    %126 = vector.shape_cast %125 : vector<1x1x16xf32> to vector<1x16xf32>
    %127 = vector.shape_cast %123 : vector<1x16xf32> to vector<1x1x16xf32>
    tpu.vector_store %arg6[%124, %c5, %c0_49], %127 {strides = array<i32>} : memref<2x8x16xf32, #tpu.memory_space<vmem>>, vector<1x1x16xf32>,
    %c6_i32 = arith.constant 6 : i32
    %128 = arith.addi %28, %c6_i32 : i32
    %129 = arith.index_cast %128 : i32 to index
    %130 = memref.load %arg1[%129] : memref<16xi32, #tpu.memory_space<smem>>
    %c0_i32_50 = arith.constant 0 : i32
    %c7_i32_51 = arith.constant 7 : i32
    %131 = arith.maxsi %c0_i32_50, %130 : i32
    %132 = arith.minsi %c7_i32_51, %131 : i32
    %133 = arith.index_cast %c0_i32 : i32 to index
    %134 = arith.index_cast %132 : i32 to index
    %c0_52 = arith.constant 0 : index
    %135 = vector.load %arg7[%133, %134, %c0_52] : memref<2x8x16xf32, #tpu.memory_space<vmem>>, vector<1x1x16xf32>
    %136 = vector.shape_cast %135 : vector<1x1x16xf32> to vector<1x16xf32>
    %c6_i32_53 = arith.constant 6 : i32
    %137 = arith.cmpi sgt, %31, %c6_i32_53 : i32
    %cst_54 = arith.constant 0.000000e+00 : f32
    %138 = vector.broadcast %cst_54 : f32 to vector<1x16xf32>
    %139 = arith.select %137, %136, %138 : vector<1x16xf32>
    %140 = arith.index_cast %c0_i32 : i32 to index
    %c6 = arith.constant 6 : index
    %c0_55 = arith.constant 0 : index
    %141 = vector.load %arg6[%140, %c6, %c0_55] : memref<2x8x16xf32, #tpu.memory_space<vmem>>, vector<1x1x16xf32>
    %142 = vector.shape_cast %141 : vector<1x1x16xf32> to vector<1x16xf32>
    %143 = vector.shape_cast %139 : vector<1x16xf32> to vector<1x1x16xf32>
    tpu.vector_store %arg6[%140, %c6, %c0_55], %143 {strides = array<i32>} : memref<2x8x16xf32, #tpu.memory_space<vmem>>, vector<1x1x16xf32>,
    %c7_i32_56 = arith.constant 7 : i32
    %144 = arith.addi %28, %c7_i32_56 : i32
    %145 = arith.index_cast %144 : i32 to index
    %146 = memref.load %arg1[%145] : memref<16xi32, #tpu.memory_space<smem>>
    %c0_i32_57 = arith.constant 0 : i32
    %c7_i32_58 = arith.constant 7 : i32
    %147 = arith.maxsi %c0_i32_57, %146 : i32
    %148 = arith.minsi %c7_i32_58, %147 : i32
    %149 = arith.index_cast %c0_i32 : i32 to index
    %150 = arith.index_cast %148 : i32 to index
    %c0_59 = arith.constant 0 : index
    %151 = vector.load %arg7[%149, %150, %c0_59] : memref<2x8x16xf32, #tpu.memory_space<vmem>>, vector<1x1x16xf32>
    %152 = vector.shape_cast %151 : vector<1x1x16xf32> to vector<1x16xf32>
    %c7_i32_60 = arith.constant 7 : i32
    %153 = arith.cmpi sgt, %31, %c7_i32_60 : i32
    %cst_61 = arith.constant 0.000000e+00 : f32
    %154 = vector.broadcast %cst_61 : f32 to vector<1x16xf32>
    %155 = arith.select %153, %152, %154 : vector<1x16xf32>
    %156 = arith.index_cast %c0_i32 : i32 to index
    %c7 = arith.constant 7 : index
    %c0_62 = arith.constant 0 : index
    %157 = vector.load %arg6[%156, %c7, %c0_62] : memref<2x8x16xf32, #tpu.memory_space<vmem>>, vector<1x1x16xf32>
    %158 = vector.shape_cast %157 : vector<1x1x16xf32> to vector<1x16xf32>
    %159 = vector.shape_cast %155 : vector<1x16xf32> to vector<1x1x16xf32>
    tpu.vector_store %arg6[%156, %c7, %c0_62], %159 {strides = array<i32>} : memref<2x8x16xf32, #tpu.memory_space<vmem>>, vector<1x1x16xf32>,
    %c1_i32_63 = arith.constant 1 : i32
    %160 = arith.addi %26, %c1_i32_63 : i32
    %c8_i32_64 = arith.constant 8 : i32
    %161 = arith.muli %160, %c8_i32_64 : i32
    %162 = arith.addi %26, %c1_i32_63 : i32
    %163 = arith.index_cast %162 : i32 to index
    %164 = memref.load %arg2[%163] : memref<2xi32, #tpu.memory_space<smem>>
    %c0_i32_65 = arith.constant 0 : i32
    %165 = arith.addi %161, %c0_i32_65 : i32
    %166 = arith.index_cast %165 : i32 to index
    %167 = memref.load %arg1[%166] : memref<16xi32, #tpu.memory_space<smem>>
    %c0_i32_66 = arith.constant 0 : i32
    %c7_i32_67 = arith.constant 7 : i32
    %168 = arith.maxsi %c0_i32_66, %167 : i32
    %169 = arith.minsi %c7_i32_67, %168 : i32
    %170 = arith.index_cast %c1_i32_63 : i32 to index
    %171 = arith.index_cast %169 : i32 to index
    %c0_68 = arith.constant 0 : index
    %172 = vector.load %arg7[%170, %171, %c0_68] : memref<2x8x16xf32, #tpu.memory_space<vmem>>, vector<1x1x16xf32>
    %173 = vector.shape_cast %172 : vector<1x1x16xf32> to vector<1x16xf32>
    %c0_i32_69 = arith.constant 0 : i32
    %174 = arith.cmpi sgt, %164, %c0_i32_69 : i32
    %cst_70 = arith.constant 0.000000e+00 : f32
    %175 = vector.broadcast %cst_70 : f32 to vector<1x16xf32>
    %176 = arith.select %174, %173, %175 : vector<1x16xf32>
    %177 = arith.index_cast %c1_i32_63 : i32 to index
    %c0_71 = arith.constant 0 : index
    %c0_72 = arith.constant 0 : index
    %178 = vector.load %arg6[%177, %c0_71, %c0_72] : memref<2x8x16xf32, #tpu.memory_space<vmem>>, vector<1x1x16xf32>
    %179 = vector.shape_cast %178 : vector<1x1x16xf32> to vector<1x16xf32>
    %180 = vector.shape_cast %176 : vector<1x16xf32> to vector<1x1x16xf32>
    tpu.vector_store %arg6[%177, %c0_71, %c0_72], %180 {strides = array<i32>} : memref<2x8x16xf32, #tpu.memory_space<vmem>>, vector<1x1x16xf32>,
    %c1_i32_73 = arith.constant 1 : i32
    %181 = arith.addi %161, %c1_i32_73 : i32
    %182 = arith.index_cast %181 : i32 to index
    %183 = memref.load %arg1[%182] : memref<16xi32, #tpu.memory_space<smem>>
    %c0_i32_74 = arith.constant 0 : i32
    %c7_i32_75 = arith.constant 7 : i32
    %184 = arith.maxsi %c0_i32_74, %183 : i32
    %185 = arith.minsi %c7_i32_75, %184 : i32
    %186 = arith.index_cast %c1_i32_63 : i32 to index
    %187 = arith.index_cast %185 : i32 to index
    %c0_76 = arith.constant 0 : index
    %188 = vector.load %arg7[%186, %187, %c0_76] : memref<2x8x16xf32, #tpu.memory_space<vmem>>, vector<1x1x16xf32>
    %189 = vector.shape_cast %188 : vector<1x1x16xf32> to vector<1x16xf32>
    %c1_i32_77 = arith.constant 1 : i32
    %190 = arith.cmpi sgt, %164, %c1_i32_77 : i32
    %cst_78 = arith.constant 0.000000e+00 : f32
    %191 = vector.broadcast %cst_78 : f32 to vector<1x16xf32>
    %192 = arith.select %190, %189, %191 : vector<1x16xf32>
    %193 = arith.index_cast %c1_i32_63 : i32 to index
    %c1_79 = arith.constant 1 : index
    %c0_80 = arith.constant 0 : index
    %194 = vector.load %arg6[%193, %c1_79, %c0_80] : memref<2x8x16xf32, #tpu.memory_space<vmem>>, vector<1x1x16xf32>
    %195 = vector.shape_cast %194 : vector<1x1x16xf32> to vector<1x16xf32>
    %196 = vector.shape_cast %192 : vector<1x16xf32> to vector<1x1x16xf32>
    tpu.vector_store %arg6[%193, %c1_79, %c0_80], %196 {strides = array<i32>} : memref<2x8x16xf32, #tpu.memory_space<vmem>>, vector<1x1x16xf32>,
    %c2_i32_81 = arith.constant 2 : i32
    %197 = arith.addi %161, %c2_i32_81 : i32
    %198 = arith.index_cast %197 : i32 to index
    %199 = memref.load %arg1[%198] : memref<16xi32, #tpu.memory_space<smem>>
    %c0_i32_82 = arith.constant 0 : i32
    %c7_i32_83 = arith.constant 7 : i32
    %200 = arith.maxsi %c0_i32_82, %199 : i32
    %201 = arith.minsi %c7_i32_83, %200 : i32
    %202 = arith.index_cast %c1_i32_63 : i32 to index
    %203 = arith.index_cast %201 : i32 to index
    %c0_84 = arith.constant 0 : index
    %204 = vector.load %arg7[%202, %203, %c0_84] : memref<2x8x16xf32, #tpu.memory_space<vmem>>, vector<1x1x16xf32>
    %205 = vector.shape_cast %204 : vector<1x1x16xf32> to vector<1x16xf32>
    %c2_i32_85 = arith.constant 2 : i32
    %206 = arith.cmpi sgt, %164, %c2_i32_85 : i32
    %cst_86 = arith.constant 0.000000e+00 : f32
    %207 = vector.broadcast %cst_86 : f32 to vector<1x16xf32>
    %208 = arith.select %206, %205, %207 : vector<1x16xf32>
    %209 = arith.index_cast %c1_i32_63 : i32 to index
    %c2_87 = arith.constant 2 : index
    %c0_88 = arith.constant 0 : index
    %210 = vector.load %arg6[%209, %c2_87, %c0_88] : memref<2x8x16xf32, #tpu.memory_space<vmem>>, vector<1x1x16xf32>
    %211 = vector.shape_cast %210 : vector<1x1x16xf32> to vector<1x16xf32>
    %212 = vector.shape_cast %208 : vector<1x16xf32> to vector<1x1x16xf32>
    tpu.vector_store %arg6[%209, %c2_87, %c0_88], %212 {strides = array<i32>} : memref<2x8x16xf32, #tpu.memory_space<vmem>>, vector<1x1x16xf32>,
    %c3_i32_89 = arith.constant 3 : i32
    %213 = arith.addi %161, %c3_i32_89 : i32
    %214 = arith.index_cast %213 : i32 to index
    %215 = memref.load %arg1[%214] : memref<16xi32, #tpu.memory_space<smem>>
    %c0_i32_90 = arith.constant 0 : i32
    %c7_i32_91 = arith.constant 7 : i32
    %216 = arith.maxsi %c0_i32_90, %215 : i32
    %217 = arith.minsi %c7_i32_91, %216 : i32
    %218 = arith.index_cast %c1_i32_63 : i32 to index
    %219 = arith.index_cast %217 : i32 to index
    %c0_92 = arith.constant 0 : index
    %220 = vector.load %arg7[%218, %219, %c0_92] : memref<2x8x16xf32, #tpu.memory_space<vmem>>, vector<1x1x16xf32>
    %221 = vector.shape_cast %220 : vector<1x1x16xf32> to vector<1x16xf32>
    %c3_i32_93 = arith.constant 3 : i32
    %222 = arith.cmpi sgt, %164, %c3_i32_93 : i32
    %cst_94 = arith.constant 0.000000e+00 : f32
    %223 = vector.broadcast %cst_94 : f32 to vector<1x16xf32>
    %224 = arith.select %222, %221, %223 : vector<1x16xf32>
    %225 = arith.index_cast %c1_i32_63 : i32 to index
    %c3_95 = arith.constant 3 : index
    %c0_96 = arith.constant 0 : index
    %226 = vector.load %arg6[%225, %c3_95, %c0_96] : memref<2x8x16xf32, #tpu.memory_space<vmem>>, vector<1x1x16xf32>
    %227 = vector.shape_cast %226 : vector<1x1x16xf32> to vector<1x16xf32>
    %228 = vector.shape_cast %224 : vector<1x16xf32> to vector<1x1x16xf32>
    tpu.vector_store %arg6[%225, %c3_95, %c0_96], %228 {strides = array<i32>} : memref<2x8x16xf32, #tpu.memory_space<vmem>>, vector<1x1x16xf32>,
    %c4_i32_97 = arith.constant 4 : i32
    %229 = arith.addi %161, %c4_i32_97 : i32
    %230 = arith.index_cast %229 : i32 to index
    %231 = memref.load %arg1[%230] : memref<16xi32, #tpu.memory_space<smem>>
    %c0_i32_98 = arith.constant 0 : i32
    %c7_i32_99 = arith.constant 7 : i32
    %232 = arith.maxsi %c0_i32_98, %231 : i32
    %233 = arith.minsi %c7_i32_99, %232 : i32
    %234 = arith.index_cast %c1_i32_63 : i32 to index
    %235 = arith.index_cast %233 : i32 to index
    %c0_100 = arith.constant 0 : index
    %236 = vector.load %arg7[%234, %235, %c0_100] : memref<2x8x16xf32, #tpu.memory_space<vmem>>, vector<1x1x16xf32>
    %237 = vector.shape_cast %236 : vector<1x1x16xf32> to vector<1x16xf32>
    %c4_i32_101 = arith.constant 4 : i32
    %238 = arith.cmpi sgt, %164, %c4_i32_101 : i32
    %cst_102 = arith.constant 0.000000e+00 : f32
    %239 = vector.broadcast %cst_102 : f32 to vector<1x16xf32>
    %240 = arith.select %238, %237, %239 : vector<1x16xf32>
    %241 = arith.index_cast %c1_i32_63 : i32 to index
    %c4_103 = arith.constant 4 : index
    %c0_104 = arith.constant 0 : index
    %242 = vector.load %arg6[%241, %c4_103, %c0_104] : memref<2x8x16xf32, #tpu.memory_space<vmem>>, vector<1x1x16xf32>
    %243 = vector.shape_cast %242 : vector<1x1x16xf32> to vector<1x16xf32>
    %244 = vector.shape_cast %240 : vector<1x16xf32> to vector<1x1x16xf32>
    tpu.vector_store %arg6[%241, %c4_103, %c0_104], %244 {strides = array<i32>} : memref<2x8x16xf32, #tpu.memory_space<vmem>>, vector<1x1x16xf32>,
    %c5_i32_105 = arith.constant 5 : i32
    %245 = arith.addi %161, %c5_i32_105 : i32
    %246 = arith.index_cast %245 : i32 to index
    %247 = memref.load %arg1[%246] : memref<16xi32, #tpu.memory_space<smem>>
    %c0_i32_106 = arith.constant 0 : i32
    %c7_i32_107 = arith.constant 7 : i32
    %248 = arith.maxsi %c0_i32_106, %247 : i32
    %249 = arith.minsi %c7_i32_107, %248 : i32
    %250 = arith.index_cast %c1_i32_63 : i32 to index
    %251 = arith.index_cast %249 : i32 to index
    %c0_108 = arith.constant 0 : index
    %252 = vector.load %arg7[%250, %251, %c0_108] : memref<2x8x16xf32, #tpu.memory_space<vmem>>, vector<1x1x16xf32>
    %253 = vector.shape_cast %252 : vector<1x1x16xf32> to vector<1x16xf32>
    %c5_i32_109 = arith.constant 5 : i32
    %254 = arith.cmpi sgt, %164, %c5_i32_109 : i32
    %cst_110 = arith.constant 0.000000e+00 : f32
    %255 = vector.broadcast %cst_110 : f32 to vector<1x16xf32>
    %256 = arith.select %254, %253, %255 : vector<1x16xf32>
    %257 = arith.index_cast %c1_i32_63 : i32 to index
    %c5_111 = arith.constant 5 : index
    %c0_112 = arith.constant 0 : index
    %258 = vector.load %arg6[%257, %c5_111, %c0_112] : memref<2x8x16xf32, #tpu.memory_space<vmem>>, vector<1x1x16xf32>
    %259 = vector.shape_cast %258 : vector<1x1x16xf32> to vector<1x16xf32>
    %260 = vector.shape_cast %256 : vector<1x16xf32> to vector<1x1x16xf32>
    tpu.vector_store %arg6[%257, %c5_111, %c0_112], %260 {strides = array<i32>} : memref<2x8x16xf32, #tpu.memory_space<vmem>>, vector<1x1x16xf32>,
    %c6_i32_113 = arith.constant 6 : i32
    %261 = arith.addi %161, %c6_i32_113 : i32
    %262 = arith.index_cast %261 : i32 to index
    %263 = memref.load %arg1[%262] : memref<16xi32, #tpu.memory_space<smem>>
    %c0_i32_114 = arith.constant 0 : i32
    %c7_i32_115 = arith.constant 7 : i32
    %264 = arith.maxsi %c0_i32_114, %263 : i32
    %265 = arith.minsi %c7_i32_115, %264 : i32
    %266 = arith.index_cast %c1_i32_63 : i32 to index
    %267 = arith.index_cast %265 : i32 to index
    %c0_116 = arith.constant 0 : index
    %268 = vector.load %arg7[%266, %267, %c0_116] : memref<2x8x16xf32, #tpu.memory_space<vmem>>, vector<1x1x16xf32>
    %269 = vector.shape_cast %268 : vector<1x1x16xf32> to vector<1x16xf32>
    %c6_i32_117 = arith.constant 6 : i32
    %270 = arith.cmpi sgt, %164, %c6_i32_117 : i32
    %cst_118 = arith.constant 0.000000e+00 : f32
    %271 = vector.broadcast %cst_118 : f32 to vector<1x16xf32>
    %272 = arith.select %270, %269, %271 : vector<1x16xf32>
    %273 = arith.index_cast %c1_i32_63 : i32 to index
    %c6_119 = arith.constant 6 : index
    %c0_120 = arith.constant 0 : index
    %274 = vector.load %arg6[%273, %c6_119, %c0_120] : memref<2x8x16xf32, #tpu.memory_space<vmem>>, vector<1x1x16xf32>
    %275 = vector.shape_cast %274 : vector<1x1x16xf32> to vector<1x16xf32>
    %276 = vector.shape_cast %272 : vector<1x16xf32> to vector<1x1x16xf32>
    tpu.vector_store %arg6[%273, %c6_119, %c0_120], %276 {strides = array<i32>} : memref<2x8x16xf32, #tpu.memory_space<vmem>>, vector<1x1x16xf32>,
    %c7_i32_121 = arith.constant 7 : i32
    %277 = arith.addi %161, %c7_i32_121 : i32
    %278 = arith.index_cast %277 : i32 to index
    %279 = memref.load %arg1[%278] : memref<16xi32, #tpu.memory_space<smem>>
    %c0_i32_122 = arith.constant 0 : i32
    %c7_i32_123 = arith.constant 7 : i32
    %280 = arith.maxsi %c0_i32_122, %279 : i32
    %281 = arith.minsi %c7_i32_123, %280 : i32
    %282 = arith.index_cast %c1_i32_63 : i32 to index
    %283 = arith.index_cast %281 : i32 to index
    %c0_124 = arith.constant 0 : index
    %284 = vector.load %arg7[%282, %283, %c0_124] : memref<2x8x16xf32, #tpu.memory_space<vmem>>, vector<1x1x16xf32>
    %285 = vector.shape_cast %284 : vector<1x1x16xf32> to vector<1x16xf32>
    %c7_i32_125 = arith.constant 7 : i32
    %286 = arith.cmpi sgt, %164, %c7_i32_125 : i32
    %cst_126 = arith.constant 0.000000e+00 : f32
    %287 = vector.broadcast %cst_126 : f32 to vector<1x16xf32>
    %288 = arith.select %286, %285, %287 : vector<1x16xf32>
    %289 = arith.index_cast %c1_i32_63 : i32 to index
    %c7_127 = arith.constant 7 : index
    %c0_128 = arith.constant 0 : index
    %290 = vector.load %arg6[%289, %c7_127, %c0_128] : memref<2x8x16xf32, #tpu.memory_space<vmem>>, vector<1x1x16xf32>
    %291 = vector.shape_cast %290 : vector<1x1x16xf32> to vector<1x16xf32>
    %292 = vector.shape_cast %288 : vector<1x16xf32> to vector<1x1x16xf32>
    tpu.vector_store %arg6[%289, %c7_127, %c0_128], %292 {strides = array<i32>} : memref<2x8x16xf32, #tpu.memory_space<vmem>>, vector<1x1x16xf32>,
    %c2_i32_129 = arith.constant 2 : i32
    return
  }
  func.func @transform_0(%arg0: i32, %arg1: memref<16xi32, #tpu.memory_space<smem>>, %arg2: memref<2xi32, #tpu.memory_space<smem>>) -> (i32, i32) {
    %c0_i32 = arith.constant 0 : i32
    %c0_i32_0 = arith.constant 0 : i32
    return %arg0, %c0_i32 : i32, i32
  }
  func.func @transform_1(%arg0: i32, %arg1: memref<16xi32, #tpu.memory_space<smem>>, %arg2: memref<2xi32, #tpu.memory_space<smem>>) -> (i32, i32, i32) {
    %c0_i32 = arith.constant 0 : i32
    %c0_i32_0 = arith.constant 0 : i32
    %c0_i32_1 = arith.constant 0 : i32
    return %arg0, %c0_i32, %c0_i32_0 : i32, i32, i32
  }
  func.func @transform_2(%arg0: i32, %arg1: memref<16xi32, #tpu.memory_space<smem>>, %arg2: memref<2xi32, #tpu.memory_space<smem>>) -> (i32, i32) {
    %c0_i32 = arith.constant 0 : i32
    %c0_i32_0 = arith.constant 0 : i32
    return %arg0, %c0_i32 : i32, i32
  }
  func.func @transform_3(%arg0: i32, %arg1: memref<16xi32, #tpu.memory_space<smem>>, %arg2: memref<2xi32, #tpu.memory_space<smem>>) -> (i32, i32, i32) {
    %c0_i32 = arith.constant 0 : i32
    %c0_i32_0 = arith.constant 0 : i32
    %c0_i32_1 = arith.constant 0 : i32
    return %arg0, %c0_i32, %c0_i32_0 : i32, i32, i32
  }
}

</mosaic_0001>

<bundles_post_ra>
// kernel: tpu_custom_call.1
= control target key start
LH: loop header
LB: loop body
LE: loop exit
PB: predicated region body
PF: predicated region fallthrough
CT: control target
= control target key end

     0   :  { %s622_s18 = smov [#allocation4]   ;;  %s966_s0 = inlined_call_operand.hbm [shape: s32[16], index: 0, kind: input, shape index: {}]   ;;  %s967_s2 = inlined_call_operand.vmem [shape: f32[2,16], index: 2, kind: input, shape index: {}]   ;;  %s968_s3 = inlined_call_operand.hbm [shape: f32[2,8,16], index: 3, kind: input, shape index: {}]   ;;  %s969_s4 = inlined_call_operand.hbm [shape: f32[2,16], index: 4, kind: output, shape index: {0}]   ;;  %s970_s5 = inlined_call_operand.hbm [shape: f32[2,8,16], index: 5, kind: output, shape index: {1}]   ;;  %s971_s1 = inlined_call_operand.vmem [shape: s32[2], index: 1, kind: input, shape index: {}]  }
   0x1   :  { %974 = sst [smem:[#allocation21_spill]] %s970_s5  ;;  %s13_s23 = sshll.u32 %s971_s1, 4  ;;  %s14_s23 = int_to_ptr.vmem [resolvable:$true] %s13_s23 }
   0x2   :  { %12 = dma.hbm_to_smem %s966_s0, 16, %s622_s18, [#allocation3] }
   0x3   :  { %s542_s24 = scalar_lea.vmem %s14_s23, 16  ;;  %p547_p1 = scmp.lt.s32.totalorder %s14_s23, %s14_s23 }
   0x4   :  { %p543_p0 = scmp.ne.s32.totalorder %s14_s23, %s542_s24  ;;  %p548_p2 = scmp.lt.s32.totalorder %s542_s24, %s542_s24 }
   0x6   :  { %p549_p3 = por %p548_p2, %p547_p1 }
   0x8   :  { %p550_p4 = pnand %p549_p3, %p543_p0 }
   0xa   :  { %553 = shalt.err (!%p550_p4)  }
   0xb   :  { %s623_s25 = smov [#allocation5]  }
   0xc   :  { %16 = dma.vmem_to_smem %s14_s23, 16, %s623_s25, [#allocation3] }
   0xd   :  { %614 = dma.done.wait [#allocation3], 32 }
   0xe   :  { %615 = vsyncadd [#allocation3], 4294967264 }
   0xf   :  { %18 = sfence }
  0x10   :  { %19 = vsyncpa [#allocation7], 0 }
  0x11   :  { %20 = vsyncpa [#allocation8], 0 }
  0x12   :  { %21 = vsyncpa [#allocation11], 0  ;;  %s624_s0 = smov [#allocation6]  }
  0x13   :  { %s29_s26 = sshll.u32 %s624_s0, 4  ;;  %s30_s26 = int_to_ptr.vmem [resolvable:$true] %s29_s26 }
  0x14   :  { %s562_s1 = scalar_lea.vmem %s30_s26, 256  ;;  %p567_p6 = scmp.lt.s32.totalorder %s30_s26, %s30_s26 }
  0x15   :  { %p563_p5 = scmp.ne.s32.totalorder %s30_s26, %s562_s1  ;;  %p568_p7 = scmp.lt.s32.totalorder %s562_s1, %s562_s1 }
  0x17   :  { %p569_p8 = por %p568_p7, %p567_p6 }
  0x19   :  { %p570_p9 = pnand %p569_p8, %p563_p5 }
  0x1b   :  { %573 = shalt.err (!%p570_p9)
}
  0x1c   :  { %s972_s27 = smov 128   ;;  %s973_s28 = smov 8  }
  0x1d   :  { %35 = dma.hbm_to_vmem [thread:$0]  %s968_s3, 256, %s30_s26, [#allocation7], %s972_s27, %s972_s27, %s973_s28  }
  0x1e   :  { %616 = dma.done.wait [#allocation7], 256  }
  0x1f   :  { %617 = vsyncadd [#allocation7], 4294967040  ;;  %vm57_vm0 = vcmask 130048   ;;  %vm40_vm1 = vcmask 123904   ;;  %v671_v0 = vld [vmem:[#allocation6] sm:$0xff]  ;;  %v673_v1 = vld [vmem:[#allocation6 + $0x8] sm:$0xff] }
  0x20   :  { %v678_v2 = vld [vmem:[%s967_s2] sm:$0x3]  ;;  %v58_v3 = vsel %vm57_vm0, %v671_v0, -inf  ;;  %v61_v5 = vsel %vm57_vm0, %v673_v1, -inf  ;;  %s89_s2 = sld [smem:[#allocation4]] }
  0x21   :  { %v41_v4 = vsel %vm40_vm1, %v678_v2, -inf  ;;  %59 = vmax.xlane.f32.xlu0 %v58_v3  ;;  %s701_s3 = sld [smem:[#allocation5]] }
  0x22   :  { %42 = vmax.xlane.f32.xlu1 %v41_v4  ;;  %s384_s8 = sld [smem:[#allocation4 + $0x1]] }
  0x23   :  { %s390_s9 = sld [smem:[#allocation4 + $0x2]] }
  0x24   :  { %s396_s10 = sld [smem:[#allocation4 + $0x3]] }
  0x25   :  { %62 = vmax.xlane.f32.xlu0 %v61_v5  ;;  %s402_s11 = sld [smem:[#allocation4 + $0x4]] }
  0x26   :  { %p90_p10 = scmp.gt.s32.totalorder %s89_s2, 0  ;;  %p379_p11 = scmp.lt.s32.totalorder %s89_s2, 7 }
  0x27   :  { %p96_p12 = scmp.gt.s32.totalorder %s701_s3, 0  ;;  %p111_p0 = scmp.gt.s32.totalorder %s701_s3, 1 }
  0x28   :  { %s1039_s2 = smov (!%p90_p10, %s89_s2), 0  ;;  %p105_p13 = scmp.gt.s32.totalorder %s384_s8, 0 }
  0x29   :  { %s1041_s2 = smov (!%p379_p11, %s1039_s2), 7  ;;  %p385_p1 = scmp.lt.s32.totalorder %s384_s8, 7 }
  0x2a   :  { %p119_p2 = scmp.gt.s32.totalorder %s390_s9, 0  ;;  %s1043_s8 = smov (!%p105_p13, %s384_s8), 0 }
  0x2b   :  { %s707_s12 = scalar_select %p96_p12, 1, 0 }
  0x2c   :  { %s709_s13 = scalar_select %p111_p0, 1, 0 }
  0x2d   :  { %s120_s14 = scalar_select %p119_p2, %s390_s9, 0  ;;  %v98_v32 = vstv %s707_s12 }
  0x2e   :  { %p391_p3 = scmp.lt.s32.totalorder %s390_s9, 7  ;;  %p125_p4 = scmp.gt.s32.totalorder %s701_s3, 2  ;;  %v113_v34 = vstv %s709_s13  ;;  %vm804_vm3 = vcmp.eq.s32.totalorder %v98_v32, 1 }
  0x2f   :  { %s1045_s8 = smov (!%p385_p1, %s1043_s8), 7  ;;  %p133_p5 = scmp.gt.s32.totalorder %s396_s10, 0  ;;  %vm808_vm4 = vcmp.eq.s32.totalorder %v113_v34, 1 }
  0x30   :  { %s1047_s14 = smov (!%p391_p3, %s120_s14), 7  ;;  %p147_p6 = scmp.gt.s32.totalorder %s402_s11, 0 }
  0x31   :  { %s716_s15 = scalar_select %p125_p4, 1, 0 }
  0x32   :  { %s134_s16 = scalar_select %p133_p5, %s396_s10, 0 }
  0x33   :  { %p397_p7 = scmp.lt.s32.totalorder %s396_s10, 7  ;;  %p139_p8 = scmp.gt.s32.totalorder %s701_s3, 3  ;;  %v127_v35 = vstv %s716_s15 }
  0x34   :  { %p403_p9 = scmp.lt.s32.totalorder %s402_s11, 7  ;;  %s408_s17 = sld [smem:[#allocation4 + $0x5]]  ;;  %vm812_vm5 = vcmp.eq.s32.totalorder %v127_v35, 1 }
  0x35   :  { %s1049_s11 = smov (!%p147_p6, %s402_s11), 0  ;;  %p153_p10 = scmp.gt.s32.totalorder %s701_s3, 4 }
  0x36   :  { %s1051_s16 = smov (!%p397_p7, %s134_s16), 7  ;;  %s1053_s11 = smov (!%p403_p9, %s1049_s11), 7 }
  0x37   :  { %s722_s18 = scalar_select %p139_p8, 1, 0 }
  0x38   :  { %s726_s19 = scalar_select %p153_p10, 1, 0 }
  0x39   :  { %s414_s20 = sld [smem:[#allocation4 + $0x6]]  ;;  %p167_p12 = scmp.gt.s32.totalorder %s701_s3, 5  ;;  %v141_v36 = vstv %s722_s18 }
  0x3a   :  { %p161_p11 = scmp.gt.s32.totalorder %s408_s17, 0  ;;  %s420_s21 = sld [smem:[#allocation4 + $0x7]]  ;;  %vm816_vm6 = vcmp.eq.s32.totalorder %v141_v36, 1  ;;  %v155_v44 = vstv %s726_s19 }
  0x3b   :  { %p181_p13 = scmp.gt.s32.totalorder %s701_s3, 6  ;;  %p409_p0 = scmp.lt.s32.totalorder %s408_s17, 7 }
  0x3c   :  { %s1055_s17 = smov (!%p161_p11, %s408_s17), 0  ;;  %s734_s24 = sld [smem:[#allocation5 + $0x1]] }
  0x3d   :  { %s730_s22 = scalar_select %p167_p12, 1, 0 }
  0x3e   :  { %s732_s23 = scalar_select %p181_p13, 1, 0 }
  0x3f   :  { %p175_p1 = scmp.gt.s32.totalorder %s414_s20, 0  ;;  %s1057_s17 = smov (!%p409_p0, %s1055_s17), 7  ;;  %v169_v45 = vstv %s730_s22 }
  0x40   :  { %p189_p2 = scmp.gt.s32.totalorder %s420_s21, 0  ;;  %p195_p3 = scmp.gt.s32.totalorder %s701_s3, 7  ;;  %v183_v46 = vstv %s732_s23 }
  0x41   :  { %p415_p4 = scmp.lt.s32.totalorder %s414_s20, 7  ;;  %s427_s25 = sld [smem:[#allocation4 + $0x8]] }
  0x42   :  { %s1059_s20 = smov (!%p175_p1, %s414_s20), 0  ;;  %p421_p5 = scmp.lt.s32.totalorder %s420_s21, 7 }
  0x43   :  { %s434_s0 = sld [smem:[#allocation4 + $0x9]]  ;;  %s1061_s21 = smov (!%p189_p2, %s420_s21), 0 }
  0x44   :  { %s739_s26 = scalar_select %p195_p3, 1, 0 }
  0x45   :  { %p212_p6 = scmp.gt.s32.totalorder %s734_s24, 0  ;;  %s1063_s20 = smov (!%p415_p4, %s1059_s20), 7 }
  0x46   :  { %s1065_s21 = smov (!%p421_p5, %s1061_s21), 7  ;;  %p228_p9 = scmp.gt.s32.totalorder %s734_s24, 1  ;;  %v197_v47 = vstv %s739_s26 }
  0x47   :  { %p205_p7 = scmp.gt.s32.totalorder %s427_s25, 0  ;;  %p428_p10 = scmp.lt.s32.totalorder %s427_s25, 7 }
  0x48   :  { %s746_s1 = scalar_select %p212_p6, 1, 0 }
  0x49   :  { %p221_p8 = scmp.gt.s32.totalorder %s434_s0, 0  ;;  %s441_s30 = sld [smem:[#allocation4 + $0xa]] }
  0x4a   :  { %s206_s29 = scalar_select %p205_p7, %s427_s25, 0  ;;  %v214_v48 = vstv %s746_s1 }
  0x4b   :  { %s222_s6 = scalar_select %p221_p8, %s434_s0, 0 }
  0x4c   :  { %p435_p11 = scmp.lt.s32.totalorder %s434_s0, 7  ;;  %s448_s7 = sld [smem:[#allocation4 + $0xb]] }
  0x4d   :  { %p243_p12 = scmp.gt.s32.totalorder %s734_s24, 2  ;;  %s1067_s29 = smov (!%p428_p10, %s206_s29), 7 }
  0x4e   :  { %s750_s3 = scalar_select %p228_p9, 1, 0 }
  0x4f   :  { %s1069_s6 = smov (!%p435_p11, %s222_s6), 7  ;;  %p236_p13 = scmp.gt.s32.totalorder %s441_s30, 0 }
  0x50   :  { %975 = sst [smem:[#allocation16_spill]] %s1069_s6  ;;  %p258_p1 = scmp.gt.s32.totalorder %s734_s24, 3  ;;  %v230_v49 = vstv %s750_s3 }
  0x51   :  { %s756_s9 = scalar_select %p243_p12, 1, 0 }
  0x52   :  { %s455_s10 = sld [smem:[#allocation4 + $0xc]]  ;;  %p251_p0 = scmp.gt.s32.totalorder %s448_s7, 0 }
  0x53   :  { %p442_p2 = scmp.lt.s32.totalorder %s441_s30, 7  ;;  %s462_s25 = sld [smem:[#allocation4 + $0xd]]  ;;  %v245_v50 = vstv %s756_s9 }
  0x54   :  { %s1071_s30 = smov (!%p236_p13, %s441_s30), 0  ;;  %p449_p3 = scmp.lt.s32.totalorder %s448_s7, 7 }
  0x55   :  { %s1073_s7 = smov (!%p251_p0, %s448_s7), 0  ;;  %s1075_s30 = smov (!%p442_p2, %s1071_s30), 7 }
  0x56   :  { %s759_s0 = scalar_select %p258_p1, 1, 0 }
  0x57   :  { %976 = sst [smem:[#allocation17_spill]] %s1075_s30  ;;  %s1077_s7 = smov (!%p449_p3, %s1073_s7), 7 }
  0x58   :  { %p266_p4 = scmp.gt.s32.totalorder %s455_s10, 0  ;;  %977 = sst [smem:[#allocation18_spill]] %s1077_s7  ;;  %v260_v51 = vstv %s759_s0 }
  0x59   :  { %p273_p5 = scmp.gt.s32.totalorder %s734_s24, 4  ;;  %p281_p6 = scmp.gt.s32.totalorder %s462_s25, 0 }
  0x5a   :  { %p456_p7 = scmp.lt.s32.totalorder %s455_s10, 7  ;;  %p288_p8 = scmp.gt.s32.totalorder %s734_s24, 5 }
  0x5b   :  { %s1079_s10 = smov (!%p266_p4, %s455_s10), 0  ;;  %p463_p9 = scmp.lt.s32.totalorder %s462_s25, 7 }
  0x5c   :  { %s767_s27 = sld [smem:[#allocation4 + $0xe]]  ;;  %s1081_s25 = smov (!%p281_p6, %s462_s25), 0 }
  0x5d   :  { %s769_s28 = scalar_select %p273_p5, 1, 0 }
  0x5e   :  { %s1083_s10 = smov (!%p456_p7, %s1079_s10), 7  ;;  %s1085_s25 = smov (!%p463_p9, %s1081_s25), 7 }
  0x5f   :  { %978 = sst [smem:[#allocation19_spill]] %s1083_s10  ;;  %p303_p10 = scmp.gt.s32.totalorder %s734_s24, 6 }
  0x60   :  { %s773_s5 = scalar_select %p288_p8, 1, 0 }
  0x61   :  { %979 = sst [smem:[#allocation20_spill]] %s1085_s25  ;;  %p318_p12 = scmp.gt.s32.totalorder %s734_s24, 7 }
  0x62   :  { %s778_s7 = sld [smem:[#allocation4 + $0xf]]  ;;  %p296_p11 = scmp.gt.s32.totalorder %s767_s27, 0 }
  0x63   :  { %s783_s30 = scalar_select %p303_p10, 1, 0 }
  0x64   :  { %p470_p13 = scmp.lt.s32.totalorder %s767_s27, 7  ;;  %s627_s24 = smov [#allocation9]  }
  0x65   :  { %s297_s25 = scalar_select %p296_p11, %s767_s27, 0 }
  0x66   :  { %s788_s10 = scalar_select %p318_p12, 1, 0 }
  0x67   :  { %s330_s6 = sshll.u32 %s627_s24, 4  ;;  %s1087_s25 = smov (!%p470_p13, %s297_s25), 7  ;;  %s331_s6 = int_to_ptr.vmem [resolvable:$true] %s330_s6 }
  0x68   :  { %p311_p0 = scmp.gt.s32.totalorder %s778_s7, 0  ;;  %p477_p1 = scmp.lt.s32.totalorder %s778_s7, 7 }
  0x69   :  { %s574_s12 = scalar_lea.vmem %s331_s6, 32  ;;  %p579_p3 = scmp.lt.s32.totalorder %s331_s6, %s331_s6 }
  0x6a   :  { %s312_s27 = scalar_select %p311_p0, %s778_s7, 0 }
  0x6b   :  { %p575_p2 = scmp.ne.s32.totalorder %s331_s6, %s574_s12  ;;  %p580_p4 = scmp.lt.s32.totalorder %s574_s12, %s574_s12 }
  0x6d   :  { %p581_p5 = por %p580_p4, %p579_p3 }
  0x6f   :  { %p582_p6 = pnand %p581_p5, %p575_p2 }
  0xaa   :  { %v686_v6 = vpop.xlane.xlu0 %59 }
  0xab   :  { %v688_v7 = vpop.xlane.xlu1 %42  ;;  %v64_v8 = vsub.f32 %v671_v0, %v686_v6 }
  0xac   :  { %v44_v9 = vsub.f32 %v678_v2, %v688_v7 }
  0xad   :  { %v66_v10 = vmul.f32 1.442695, %v64_v8 }
  0xae   :  { %v45_v11 = vmul.f32 1.442695, %v44_v9  ;;  %v694_v12 = vpop.xlane.xlu0 %62 }
  0xaf   :  { %522 = vpow2.f32 %v66_v10  ;;  %v65_v13 = vsub.f32 %v673_v1, %v694_v12 }
  0xb0   :  { %524 = vpow2.f32 %v45_v11 }
  0xb1   :  { %v68_v14 = vmul.f32 1.442695, %v65_v13 }
  0xb3   :  { %526 = vpow2.f32 %v68_v14 }
  0xbc   :  { %v523_v15 = vpop.eup %522 }
  0xbd   :  { %v525_v16 = vpop.eup %524  ;;  %v70_v17 = vsel %vm57_vm0, %v523_v15, 0.0 }
  0xbe   :  { %71 = vadd.xlane.f32.xlu1 %v70_v17  ;;  %v47_v18 = vsel %vm40_vm1, %v525_v16, 0.0 }
  0xc0   :  { %v527_v19 = vpop.eup %526 }
  0xc1   :  { %v73_v20 = vsel %vm57_vm0, %v527_v19, 0.0 }
  0xc2   :  { %74 = vadd.xlane.f32.xlu0 %v73_v20  ;;  %48 = vadd.xlane.f32.xlu1 %v47_v18 }
 0x147   :  { %v72_v21 = vpop.xlane.xlu1 %71 }
 0x148   :  { %528 = vlog2.f32 %v72_v21 }
 0x14b   :  { %v75_v22 = vpop.xlane.xlu0 %74  ;;  %v49_v23 = vpop.xlane.xlu1 %48 }
 0x14c   :  { %530 = vlog2.f32 %v75_v22 }
 0x14d   :  { %532 = vlog2.f32 %v49_v23 }
 0x155   :  { %v529_v24 = vpop.eup %528 }
 0x156   :  { %v77_v25 = vmul.f32 0.6931472, %v529_v24 }
 0x158   :  { %v80_v26 = vadd.f32 %v77_v25, %v686_v6 }
 0x159   :  { %v531_v27 = vpop.eup %530 }
 0x15a   :  { %v533_v28 = vpop.eup %532  ;;  %v82_v29 = vsub.f32 %v671_v0, %v80_v26  ;;  %v79_v30 = vmul.f32 0.6931472, %v531_v27 }
 0x15b   :  { %v51_v31 = vmul.f32 0.6931472, %v533_v28 }
 0x15c   :  { %84 = vst.msk [vmem:[#allocation2] sm:$0xff] %vm57_vm0, %v82_v29  ;;  %v81_v33 = vadd.f32 %v79_v30, %v694_v12 }
 0x15d   :  { %v52_v37 = vadd.f32 %v51_v31, %v688_v7 }
 0x15e   :  { %v83_v38 = vsub.f32 %v673_v1, %v81_v33 }
 0x15f   :  { %v53_v39 = vsub.f32 %v678_v2, %v52_v37 }
 0x160   :  { %85 = vst.msk [vmem:[#allocation2 + $0x8] sm:$0xff] %vm57_vm0, %v83_v38 }
 0x161   :  { %54 = vst.msk [vmem:[#allocation9] sm:$0x3] %vm40_vm1, %v53_v39 }
 0x162   :  { %585 = shalt.err (!%p582_p6)
}
 0x163   :  { %333 = dma.vmem_to_hbm [thread:$0]  %s331_s6, 32, %s969_s4, [#allocation8]   ;;  %v275_v52 = vstv %s769_s28  ;;  %v290_v53 = vstv %s773_s5  ;;  %v305_v54 = vstv %s783_s30  ;;  %v320_v55 = vstv %s788_s10 }
 0x164   :  { %vm841_vm7 = vcmp.eq.s32.totalorder %v155_v44, 1  ;;  %vm845_vm8 = vcmp.eq.s32.totalorder %v169_v45, 1  ;;  %vm849_vm9 = vcmp.eq.s32.totalorder %v183_v46, 1  ;;  %vm853_vm10 = vcmp.eq.s32.totalorder %v197_v47, 1  ;;  %s1089_s27 = smov (!%p477_p1, %s312_s27), 7  ;;  %s94_s4 = scalar_lea.vmem [#allocation2], %s1041_s2 }
 0x165   :  { %vm857_vm11 = vcmp.eq.s32.totalorder %v214_v48, 1  ;;  %vm861_vm12 = vcmp.eq.s32.totalorder %v230_v49, 1  ;;  %vm865_vm13 = vcmp.eq.s32.totalorder %v245_v50, 1  ;;  %vm869_vm14 = vcmp.eq.s32.totalorder %v260_v51, 1  ;;  %s109_s5 = scalar_lea.vmem [#allocation2], %s1045_s8  ;;  %s123_s28 = scalar_lea.vmem [#allocation2], %s1047_s14 }
 0x166   :  { %vm877_vm15 = vcmp.eq.s32.totalorder %v275_v52, 1  ;;  %vm881_vm0 = vcmp.eq.s32.totalorder %v290_v53, 1  ;;  %v1006_v1 = vmov 0  ;;  %vm885_vm1 = vcmp.eq.s32.totalorder %v305_v54, 1  ;;  %s137_s18 = scalar_lea.vmem [#allocation2], %s1051_s16  ;;  %s628_s2 = smov [#allocation10]  }
 0x167   :  { %v1007_v1 = vsel %vm881_vm0, 4294967295, %v1006_v1  ;;  %v1008_v2 = vmov 0  ;;  %vm889_vm2 = vcmp.eq.s32.totalorder %v320_v55, 1  ;;  %v1010_v3 = vmov 0  ;;  %v95_v4 = vld [vmem:[%s94_s4] sm:$0x1] }
 0x168   :  { %v1009_v2 = vsel %vm885_vm1, 4294967295, %v1008_v2  ;;  %v1011_v3 = vsel %vm889_vm2, 4294967295, %v1010_v3  ;;  %v110_v5 = vld [vmem:[%s109_s5] sm:$0x1]  ;;  %v100_v7 = vsel %vm804_vm3, %v95_v4, 0.0  ;;  %s903_s19 = sshll.u32 %s628_s2, 4  ;;  %s340_s19 = int_to_ptr.vmem [resolvable:$true] %s903_s19 }
 0x169   :  { %v124_v6 = vld [vmem:[%s123_s28] sm:$0x1]  ;;  %v115_v8 = vsel %vm808_vm4, %v110_v5, 0.0  ;;  %vm1012_vm2 = vcmask 122880   ;;  %s151_s8 = scalar_lea.vmem [#allocation2], %s1053_s11  ;;  %s1015_s14 = sld [smem:[#allocation16_spill]] }
 0x16a   :  { %v129_v9 = vsel %vm812_vm5, %v124_v6, 0.0  ;;  %v138_v10 = vld [vmem:[%s137_s18] sm:$0x1]  ;;  %102 = vst.msk [vmem:[#allocation10] sm:$0x1] %vm1012_vm2, %v100_v7  ;;  %vm1013_vm1 = vmmov %vm1012_vm2  ;;  %s165_s22 = scalar_lea.vmem [#allocation2], %s1057_s17  ;;  %p599_p8 = scmp.lt.s32.totalorder %s340_s19, %s340_s19 }
 0x16b   :  { %116 = vst.msk [vmem:[#allocation10 + $0x1] sm:$0x1] %vm1013_vm1, %v115_v8  ;;  %vm1014_vm0 = vmmov %vm1013_vm1  ;;  %v143_v11 = vsel %vm816_vm6, %v138_v10, 0.0  ;;  %v152_v12 = vld [vmem:[%s151_s8] sm:$0x1]  ;;  %s179_s16 = scalar_lea.vmem [#allocation2], %s1063_s20 }
 0x16c   :  { %130 = vst.msk [vmem:[#allocation10 + $0x2] sm:$0x1] %vm1014_vm0, %v129_v9  ;;  %v166_v13 = vld [vmem:[%s165_s22] sm:$0x1]  ;;  %vm1016_vm3 = vmmov %vm1014_vm0  ;;  %v157_v14 = vsel %vm841_vm7, %v152_v12, 0.0  ;;  %s1017_s23 = sld [smem:[#allocation17_spill]] }
 0x16d   :  { %144 = vst.msk [vmem:[#allocation10 + $0x3] sm:$0x1] %vm1016_vm3, %v143_v11  ;;  %v171_v15 = vsel %vm845_vm8, %v166_v13, 0.0  ;;  %v180_v16 = vld [vmem:[%s179_s16] sm:$0x1]  ;;  %s193_s26 = scalar_lea.vmem [#allocation2], %s1065_s21  ;;  %vm1019_vm2 = vmmov %vm1014_vm0 }
 0x16e   :  { %s1018_s1 = sld [smem:[#allocation18_spill]]  ;;  %v194_v17 = vld [vmem:[%s193_s26] sm:$0x1]  ;;  %158 = vst.msk [vmem:[#allocation10 + $0x4] sm:$0x1] %vm1019_vm2, %v157_v14  ;;  %vm1020_vm4 = vmmov %vm1014_vm0  ;;  %v185_v18 = vsel %vm849_vm9, %v180_v16, 0.0 }
 0x16f   :  { %172 = vst.msk [vmem:[#allocation10 + $0x5] sm:$0x1] %vm1020_vm4, %v171_v15  ;;  %v199_v19 = vsel %vm853_vm10, %v194_v17, 0.0  ;;  %s363_s11 = scalar_lea.vmem [#allocation2], %s1067_s29  ;;  %s1021_s17 = sld [smem:[#allocation19_spill]]  ;;  %vm1023_vm5 = vmmov %vm1014_vm0 }
 0x170   :  { %v433_v20 = vld [vmem:[%s363_s11 + $0x8] sm:$0x1]  ;;  %s365_s30 = scalar_lea.vmem [#allocation2], %s1015_s14  ;;  %s1022_s20 = sld [smem:[#allocation20_spill]]  ;;  %186 = vst.msk [vmem:[#allocation10 + $0x6] sm:$0x1] %vm1023_vm5, %v185_v18  ;;  %vm1024_vm6 = vmmov %vm1014_vm0 }
 0x171   :  { %v440_v21 = vld [vmem:[%s365_s30 + $0x8] sm:$0x1]  ;;  %200 = vst.msk [vmem:[#allocation10 + $0x7] sm:$0x1] %vm1024_vm6, %v199_v19  ;;  %v216_v22 = vsel %vm857_vm11, %v433_v20, 0.0  ;;  %vm1025_vm7 = vmmov %vm1014_vm0  ;;  %vm1029_vm11 = vnez %v1007_v1  ;;  %s375_s3 = scalar_lea.vmem [#allocation2], %s1087_s25 }
 0x172   :  { %v232_v23 = vsel %vm861_vm12, %v440_v21, 0.0  ;;  %s367_s21 = scalar_lea.vmem [#allocation2], %s1017_s23  ;;  %218 = vst.msk [vmem:[#allocation10 + $0x8] sm:$0x1] %vm1025_vm7, %v216_v22  ;;  %vm1026_vm8 = vmmov %vm1014_vm0  ;;  %v475_v32 = vld [vmem:[%s375_s3 + $0x8] sm:$0x1] }
 0x173   :  { %v447_v24 = vld [vmem:[%s367_s21 + $0x8] sm:$0x1]  ;;  %233 = vst.msk [vmem:[#allocation10 + $0x9] sm:$0x1] %vm1026_vm8, %v232_v23  ;;  %vm1027_vm9 = vmmov %vm1014_vm0  ;;  %s377_s9 = scalar_lea.vmem [#allocation2], %s1089_s27  ;;  %s594_s10 = scalar_lea.vmem %s340_s19, 256 }
 0x174   :  { %s369_s6 = scalar_lea.vmem [#allocation2], %s1018_s1  ;;  %v247_v26 = vsel %vm865_vm13, %v447_v24, 0.0  ;;  %vm1028_vm10 = vmmov %vm1014_vm0  ;;  %v482_v33 = vld [vmem:[%s377_s9 + $0x8] sm:$0x1]  ;;  %p595_p7 = scmp.ne.s32.totalorder %s340_s19, %s594_s10 }
 0x175   :  { %v454_v25 = vld [vmem:[%s369_s6 + $0x8] sm:$0x1]  ;;  %s371_s29 = scalar_lea.vmem [#allocation2], %s1021_s17  ;;  %248 = vst.msk [vmem:[#allocation10 + $0xa] sm:$0x1] %vm1027_vm9, %v247_v26  ;;  %vm1030_vm12 = vmmov %vm1014_vm0  ;;  %p600_p9 = scmp.lt.s32.totalorder %s594_s10, %s594_s10 }
 0x176   :  { %v262_v27 = vsel %vm869_vm14, %v454_v25, 0.0  ;;  %v461_v28 = vld [vmem:[%s371_s29 + $0x8] sm:$0x1]  ;;  %s373_s7 = scalar_lea.vmem [#allocation2], %s1022_s20  ;;  %vm1031_vm13 = vmmov %vm1014_vm0  ;;  %vm1032_vm14 = vnez %v1009_v2  ;;  %vm1033_vm0 = vnez %v1011_v3 }
 0x177   :  { %v468_v29 = vld [vmem:[%s373_s7 + $0x8] sm:$0x1]  ;;  %263 = vst.msk [vmem:[#allocation10 + $0xb] sm:$0x1] %vm1028_vm10, %v262_v27  ;;  %v277_v30 = vsel %vm877_vm15, %v461_v28, 0.0  ;;  %v307_v34 = vsel %vm1032_vm14, %v475_v32, 0.0  ;;  %vm1034_vm15 = vmmov %vm1013_vm1  ;;  %p601_p10 = por %p600_p9, %p599_p8 }
 0x178   :  { %v292_v31 = vsel %vm1029_vm11, %v468_v29, 0.0  ;;  %278 = vst.msk [vmem:[#allocation10 + $0xc] sm:$0x1] %vm1030_vm12, %v277_v30  ;;  %v322_v35 = vsel %vm1033_vm0, %v482_v33, 0.0 }
 0x179   :  { %293 = vst.msk [vmem:[#allocation10 + $0xd] sm:$0x1] %vm1031_vm13, %v292_v31  ;;  %p602_p11 = pnand %p601_p10, %p595_p7 }
 0x17a   :  { %308 = vst.msk [vmem:[#allocation10 + $0xe] sm:$0x1] %vm1013_vm1, %v307_v34 }
 0x17b   :  { %323 = vst.msk [vmem:[#allocation10 + $0xf] sm:$0x1] %vm1034_vm15, %v322_v35 }
 0x17c   :  { %605 = shalt.err (!%p602_p11)
}
 0x17d   :  { %s1035_s25 = smov 8   ;;  %s1036_s0 = smov 128  }
 0x17e   :  { %s1037_s12 = sld [smem:[#allocation21_spill]] }
 0x184   :  { %345 = dma.vmem_to_hbm [thread:$0]  %s340_s19, 256, %s1037_s12, [#allocation11], %s1036_s0, %s1036_s0, %s1035_s25  }
 0x185   :  { %618 = dma.done.wait [#allocation8], 32  }
 0x186   :  { %619 = vsyncadd [#allocation8], 4294967264 }
 0x187   :  { %620 = dma.done.wait [#allocation11], 256  }
 0x188   :  { %621 = vsyncadd [#allocation11], 4294967040 }
 0x189   :  { %352 = vsyncpa [#allocation7], 1 }
 0x18a   :  { %353 = vsyncpa [#allocation8], 1 }
 0x18b   :  { %354 = vsyncpa [#allocation11], 1 }

</bundles_post_ra>
